<compile_context>
chip_gen: v7x
topology: tpu7x:2x2x1
jax: 0.10.0
libtpu: 0.0.40
codegen_flags: <defaults>
</compile_context>

<pallas_src>
import jax
import jax.numpy as jnp
from jax.experimental import pallas as pl
from jax.experimental.pallas import tpu as pltpu


def _moveaxis_kernel(x_ref, o_ref):
    # x_ref: (TB, TR, TC)  ->  o_ref: (TB, TC, TR)   (batched XLU transpose)
    o_ref[...] = jnp.transpose(x_ref[...], (0, 2, 1))


def _round_up(x, m):
    return ((x + m - 1) // m) * m


def _tile_128(dim, cap):
    """Tile size for `dim` under `cap` elements: full extent if it fits,
    otherwise a *balanced* multiple of 128 (legal for both the input block,
    where this axis may sit in the sublane slot, and the transposed output
    block, where it sits in the lane slot), so ragged edge blocks are not
    tiny masked remnants."""
    if dim <= cap:
        return dim
    cap128 = max(128, (cap // 128) * 128)
    nblocks = pl.cdiv(dim, cap128)
    t = _round_up(pl.cdiv(dim, nblocks), 128)
    return min(t, cap128)


def _select_tiles(B, R, C, itemsize, footprint_bytes):
    """Pick (TB, TR, TC) so the in+out, double-buffered VMEM footprint
    (= 4 * TB*TR*TC * itemsize) stays under `footprint_bytes`."""
    elem_budget = max(footprint_bytes // (4 * itemsize), 8 * 128)

    # 1) Last dim of the input: keep the full C (one contiguous HBM read per
    #    row block) whenever it fits next to at least a 128-row slab.
    min_tr = min(R, 128)
    if C * min_tr <= elem_budget:
        TC = C
    else:
        TC = _tile_128(C, max(elem_budget // min_tr, 128))

    # 2) Rows: grow toward full R (contiguous, lane-dense output writes),
    #    else the largest balanced multiple of 128 that fits.
    TR = _tile_128(R, max(elem_budget // TC, min_tr))

    # 3) Fold batch into the tile with whatever budget is left (amortizes the
    #    ~0.35 us per-grid-step overhead and keeps DMAs large for small R/C).
    TB = max(1, min(B, elem_budget // max(TR * TC, 1)))
    TB = pl.cdiv(B, pl.cdiv(B, TB))  # balance batch blocks

    # v7x megacore: prefer an even total block count so the 2 TensorCores
    # split the parallel grid evenly (no-op on single-TC v5e/v6e).
    nb_b, nb_c, nb_r = pl.cdiv(B, TB), pl.cdiv(C, TC), pl.cdiv(R, TR)
    total = nb_b * nb_c * nb_r
    if total > 1 and total % 2 == 1 and B > 1:
        for t in range(TB, max(TB // 2, 1) - 1, -1):
            if pl.cdiv(B, t) % 2 == 0:
                TB = t
                break

    return TB, TR, TC


def move_axis_4_to_2(x, *, force_kernel=False, footprint_bytes=16 * 1024 * 1024):
    """moveaxis(x, 4, 2) for a 5-D array, computed with a Pallas TPU kernel."""
    a0, a1, a2, a3, a4 = x.shape
    itemsize = jnp.dtype(x.dtype).itemsize

    # Fast path: for tiny tensors the pallas_call launch overhead dominates;
    # XLA's native transpose wins on every TPU generation.
    if not force_kernel and x.size * itemsize < (1 << 20):
        return jnp.moveaxis(x, 4, 2)

    B, R, C = a0 * a1, a2 * a3, a4

    # Free reshape (row-major contiguous): (A0,A1,A2,A3,A4) -> (B, R, C)
    x_flat = x.reshape(B, R, C)

    TB, TR, TC = _select_tiles(B, R, C, itemsize, footprint_bytes)
    nb_b, nb_c, nb_r = pl.cdiv(B, TB), pl.cdiv(C, TC), pl.cdiv(R, TR)

    # in + out tiles, double-buffered, plus headroom for compiler scratch.
    footprint = 4 * TB * TR * TC * itemsize
    vmem_limit = int(min(100 * 1024 * 1024,
                         max(32 * 1024 * 1024, footprint + 8 * 1024 * 1024)))

    out_flat = pl.pallas_call(
        _moveaxis_kernel,
        out_shape=jax.ShapeDtypeStruct((B, C, R), x.dtype),
        grid_spec=pltpu.PrefetchScalarGridSpec(
            num_scalar_prefetch=0,
            # R-tile axis innermost: consecutive steps advance the output's
            # last dim -> sequential writeback DMA stream.
            grid=(nb_b, nb_c, nb_r),
            in_specs=[
                pl.BlockSpec((TB, TR, TC), lambda b, c, r: (b, r, c)),
            ],
            # transposed tile lands at the transposed block index
            out_specs=pl.BlockSpec((TB, TC, TR), lambda b, c, r: (b, c, r)),
        ),
        compiler_params=pltpu.CompilerParams(
            dimension_semantics=("parallel", "parallel", "parallel"),
            vmem_limit_bytes=vmem_limit,
        ),
        cost_estimate=pl.CostEstimate(
            flops=0,
            transcendentals=0,
            bytes_accessed=2 * x.size * itemsize,
        ),
    )(x_flat)

    # Free reshape back: (B, C, R) -> (A0, A1, A4, A2, A3)
    return out_flat.reshape(a0, a1, a4, a2, a3)


if __name__ == "__main__":
    key = jax.random.PRNGKey(0)
    k1, k2, k3, k4 = jax.random.split(key, 4)

    # 1) aligned f32 shape -- batch folded into one big tile (single grid step)
    x1 = jax.random.normal(k1, (2, 4, 8, 16, 128), dtype=jnp.float32)
    y1 = jax.block_until_ready(move_axis_4_to_2(x1, force_kernel=True))
    assert y1.shape == (2, 4, 128, 8, 16), y1.shape
    assert jnp.array_equal(y1, jnp.moveaxis(x1, 4, 2))

    # 2) ragged bf16 shape (full-extent, non-128-multiple last dims)
    x2 = jax.random.normal(k2, (1, 3, 6, 40, 200), dtype=jnp.bfloat16)
    y2 = jax.block_until_ready(move_axis_4_to_2(x2, force_kernel=True))
    assert y2.shape == (1, 3, 200, 6, 40), y2.shape
    assert jnp.array_equal(y2, jnp.moveaxis(x2, 4, 2))

    # 3) force multi-block tiling (ragged edge blocks + transposed index maps)
    #    by shrinking the VMEM footprint budget
    x3 = jax.random.normal(k3, (2, 2, 10, 40, 384), dtype=jnp.float32)
    y3 = jax.block_until_ready(
        move_axis_4_to_2(x3, force_kernel=True, footprint_bytes=256 * 1024))
    assert y3.shape == (2, 2, 384, 10, 40), y3.shape
    assert jnp.array_equal(y3, jnp.moveaxis(x3, 4, 2))

    # 4) tiny tensor -> wrapper fast path (no pallas_call)
    x4 = jax.random.normal(k4, (1, 2, 3, 4, 5), dtype=jnp.float32)
    y4 = jax.block_until_ready(move_axis_4_to_2(x4))
    assert jnp.array_equal(y4, jnp.moveaxis(x4, 4, 2))

    print("KERNEL_OK")
</pallas_src>

<mosaic_0001>
module attributes {stable_mosaic.version = 11 : i64} {
  func.func @_moveaxis_kernel(%arg0: i32, %arg1: i32, %arg2: i32, %arg3: memref<8x128x128xf32, #tpu.memory_space<vmem>>, %arg4: memref<8x128x128xf32, #tpu.memory_space<vmem>>) attributes {dimension_semantics = [#tpu.dimension_semantics<parallel>, #tpu.dimension_semantics<parallel>, #tpu.dimension_semantics<parallel>], iteration_bounds = array<i64: 1, 1, 1>, scalar_prefetch = 0 : i64, scratch_operands = 0 : i64, tpu.core_type = #tpu.core_type<tc>, window_params = [{transform_indices = @transform_0, window_bounds = array<i64: 8, 128, 128>}, {transform_indices = @transform_1, window_bounds = array<i64: 8, 128, 128>}]} {
    %c0 = arith.constant 0 : index
    %c0_0 = arith.constant 0 : index
    %c0_1 = arith.constant 0 : index
    %0 = vector.load %arg3[%c0, %c0_0, %c0_1] : memref<8x128x128xf32, #tpu.memory_space<vmem>>, vector<8x128x128xf32>
    %1 = tpu.transpose %0, [0, 2, 1] : vector<8x128x128xf32> -> vector<8x128x128xf32>
    %c0_2 = arith.constant 0 : index
    %c0_3 = arith.constant 0 : index
    %c0_4 = arith.constant 0 : index
    %2 = vector.load %arg4[%c0_2, %c0_3, %c0_4] : memref<8x128x128xf32, #tpu.memory_space<vmem>>, vector<8x128x128xf32>
    tpu.vector_store %arg4[%c0_2, %c0_3, %c0_4], %1 {strides = array<i32>} : memref<8x128x128xf32, #tpu.memory_space<vmem>>, vector<8x128x128xf32>,
    return
  }
  func.func @transform_0(%arg0: i32, %arg1: i32, %arg2: i32) -> (i32, i32, i32) {
    %c0_i32 = arith.constant 0 : i32
    return %arg0, %arg2, %arg1 : i32, i32, i32
  }
  func.func @transform_1(%arg0: i32, %arg1: i32, %arg2: i32) -> (i32, i32, i32) {
    %c0_i32 = arith.constant 0 : i32
    return %arg0, %arg1, %arg2 : i32, i32, i32
  }
}

</mosaic_0001>

<bundles_post_ra>
// kernel: tpu_custom_call.1
= control target key start
LH: loop header
LB: loop body
LE: loop exit
PB: predicated region body
PF: predicated region fallthrough
CT: control target
= control target key end

     0   :  { %6 = vsyncpa [#allocation3], 0  ;;  %s648_s0 = inlined_call_operand.hbm [shape: f32[8,128,128], index: 0, kind: input, shape index: {}]   ;;  %s649_s1 = inlined_call_operand.hbm [shape: f32[8,128,128], index: 1, kind: output, shape index: {}]  }
   0x1   :  { %7 = vsyncpa [#allocation4], 0  ;;  %s604_s6 = smov [#allocation2]   ;;  %s556_s10 = scalar_lea.hbm %s648_s0, 16384 }
   0x2   :  { %s13_s7 = sshll.u32 %s604_s6, 4  ;;  %p557_p0 = scmp.ne.s32.totalorder %s648_s0, %s556_s10  ;;  %s14_s7 = int_to_ptr.vmem [resolvable:$true] %s13_s7 }
   0x3   :  { %p560_p1 = scmp.lt.u32.totalorder %s556_s10, %s648_s0 }
   0x5   :  { %p562_p2 = pnand %p560_p1, %p557_p0 }
   0x7   :  { %565 = shalt.err (!%p562_p2)
}
   0x8   :  { %s566_s15 = scalar_lea.vmem %s14_s7, 16384  ;;  %p571_p4 = scmp.lt.s32.totalorder %s14_s7, %s14_s7 }
   0x9   :  { %p567_p3 = scmp.ne.s32.totalorder %s14_s7, %s566_s15  ;;  %p572_p5 = scmp.lt.s32.totalorder %s566_s15, %s566_s15 }
   0xb   :  { %p573_p6 = por %p572_p5, %p571_p4 }
   0xd   :  { %p574_p7 = pnand %p573_p6, %p567_p3 }
   0xf   :  { %577 = shalt.err (!%p574_p7)
}
  0x10   :  { %s605_s16 = smov 128   ;;  %s606_s17 = smov 8  }
  0x11   :  { %19 = dma.hbm_to_vmem [thread:$0]  %s648_s0, 16384, %s14_s7, [#allocation3], %s605_s16, %s605_s16, %s606_s17  }
  0x12   :  { %600 = dma.done.wait [#allocation3], 16384  }
  0x13   :  { %601 = vsyncadd [#allocation3], 4294950912  ;;  %v39_v0 = vld [vmem:[#allocation2 + $0x80] sm:$0xff]  ;;  %v40_v2 = vld [vmem:[#allocation2 + $0x88] sm:$0xff]  ;;  %s607_s0 = smov [#allocation5]  }
  0x14   :  { %v23_v1 = vld [vmem:[#allocation2] sm:$0xff]  ;;  %183 = vxpose.xlu1.b32.start [1/16] %v39_v0, 128  ;;  %v24_v3 = vld [vmem:[#allocation2 + $0x8] sm:$0xff]  ;;  %v41_v4 = vld [vmem:[#allocation2 + $0x90] sm:$0xff]  ;;  %s540_s20 = sshll.u32 %s607_s0, 4  ;;  %s541_s20 = int_to_ptr.vmem [resolvable:$true] %s540_s20 }
  0x15   :  { %151 = vxpose.xlu0.b32.start [1/16] %v23_v1, 128  ;;  %v25_v5 = vld [vmem:[#allocation2 + $0x10] sm:$0xff]  ;;  %v42_v6 = vld [vmem:[#allocation2 + $0x98] sm:$0xff]  ;;  %v43_v8 = vld [vmem:[#allocation2 + $0xa0] sm:$0xff]  ;;  %s578_s21 = scalar_lea.vmem %s541_s20, 16384  ;;  %p583_p9 = scmp.lt.s32.totalorder %s541_s20, %s541_s20 }
  0x16   :  { %v26_v7 = vld [vmem:[#allocation2 + $0x18] sm:$0xff]  ;;  %v27_v9 = vld [vmem:[#allocation2 + $0x20] sm:$0xff]  ;;  %v44_v10 = vld [vmem:[#allocation2 + $0xa8] sm:$0xff]  ;;  %p579_p8 = scmp.ne.s32.totalorder %s541_s20, %s578_s21  ;;  %p584_p10 = scmp.lt.s32.totalorder %s578_s21, %s578_s21 }
  0x17   :  { %v28_v11 = vld [vmem:[#allocation2 + $0x28] sm:$0xff]  ;;  %v45_v12 = vld [vmem:[#allocation2 + $0xb0] sm:$0xff]  ;;  %v46_v14 = vld [vmem:[#allocation2 + $0xb8] sm:$0xff] }
  0x18   :  { %184 = vxpose.xlu1.b32.cont [2/16] %v40_v2, 128  ;;  %v29_v13 = vld [vmem:[#allocation2 + $0x30] sm:$0xff]  ;;  %v30_v15 = vld [vmem:[#allocation2 + $0x38] sm:$0xff]  ;;  %v47_v16 = vld [vmem:[#allocation2 + $0xc0] sm:$0xff]  ;;  %p585_p11 = por %p584_p10, %p583_p9 }
  0x19   :  { %152 = vxpose.xlu0.b32.cont [2/16] %v24_v3, 128  ;;  %v31_v17 = vld [vmem:[#allocation2 + $0x40] sm:$0xff]  ;;  %v48_v18 = vld [vmem:[#allocation2 + $0xc8] sm:$0xff]  ;;  %v49_v20 = vld [vmem:[#allocation2 + $0xd0] sm:$0xff] }
  0x1a   :  { %v32_v19 = vld [vmem:[#allocation2 + $0x48] sm:$0xff]  ;;  %v33_v21 = vld [vmem:[#allocation2 + $0x50] sm:$0xff]  ;;  %v50_v22 = vld [vmem:[#allocation2 + $0xd8] sm:$0xff]  ;;  %p586_p12 = pnand %p585_p11, %p579_p8 }
  0x1b   :  { %v34_v23 = vld [vmem:[#allocation2 + $0x58] sm:$0xff]  ;;  %v51_v24 = vld [vmem:[#allocation2 + $0xe0] sm:$0xff]  ;;  %v52_v26 = vld [vmem:[#allocation2 + $0xe8] sm:$0xff] }
  0x1c   :  { %185 = vxpose.xlu1.b32.cont [3/16] %v41_v4, 128  ;;  %v35_v25 = vld [vmem:[#allocation2 + $0x60] sm:$0xff]  ;;  %v36_v27 = vld [vmem:[#allocation2 + $0x68] sm:$0xff]  ;;  %v53_v28 = vld [vmem:[#allocation2 + $0xf0] sm:$0xff] }
  0x1d   :  { %153 = vxpose.xlu0.b32.cont [3/16] %v25_v5, 128  ;;  %v37_v29 = vld [vmem:[#allocation2 + $0x70] sm:$0xff]  ;;  %v54_v30 = vld [vmem:[#allocation2 + $0xf8] sm:$0xff]  ;;  %v71_v32 = vld [vmem:[#allocation2 + $0x180] sm:$0xff] }
  0x1e   :  { %v38_v31 = vld [vmem:[#allocation2 + $0x78] sm:$0xff]  ;;  %v55_v33 = vld [vmem:[#allocation2 + $0x100] sm:$0xff]  ;;  %v72_v34 = vld [vmem:[#allocation2 + $0x188] sm:$0xff] }
  0x1f   :  { %v56_v35 = vld [vmem:[#allocation2 + $0x108] sm:$0xff]  ;;  %v73_v36 = vld [vmem:[#allocation2 + $0x190] sm:$0xff]  ;;  %v74_v38 = vld [vmem:[#allocation2 + $0x198] sm:$0xff] }
  0x20   :  { %186 = vxpose.xlu1.b32.cont [4/16] %v42_v6, 128  ;;  %v57_v37 = vld [vmem:[#allocation2 + $0x110] sm:$0xff]  ;;  %v58_v39 = vld [vmem:[#allocation2 + $0x118] sm:$0xff]  ;;  %v75_v40 = vld [vmem:[#allocation2 + $0x1a0] sm:$0xff] }
  0x21   :  { %154 = vxpose.xlu0.b32.cont [4/16] %v26_v7, 128  ;;  %v59_v41 = vld [vmem:[#allocation2 + $0x120] sm:$0xff]  ;;  %v76_v42 = vld [vmem:[#allocation2 + $0x1a8] sm:$0xff]  ;;  %v77_v44 = vld [vmem:[#allocation2 + $0x1b0] sm:$0xff] }
  0x22   :  { %v60_v43 = vld [vmem:[#allocation2 + $0x128] sm:$0xff]  ;;  %v61_v45 = vld [vmem:[#allocation2 + $0x130] sm:$0xff]  ;;  %v78_v46 = vld [vmem:[#allocation2 + $0x1b8] sm:$0xff] }
  0x23   :  { %v62_v47 = vld [vmem:[#allocation2 + $0x138] sm:$0xff]  ;;  %v79_v48 = vld [vmem:[#allocation2 + $0x1c0] sm:$0xff]  ;;  %v80_v50 = vld [vmem:[#allocation2 + $0x1c8] sm:$0xff] }
  0x24   :  { %187 = vxpose.xlu1.b32.cont [5/16] %v43_v8, 128  ;;  %v63_v49 = vld [vmem:[#allocation2 + $0x140] sm:$0xff]  ;;  %v64_v51 = vld [vmem:[#allocation2 + $0x148] sm:$0xff]  ;;  %v81_v52 = vld [vmem:[#allocation2 + $0x1d0] sm:$0xff] }
  0x25   :  { %155 = vxpose.xlu0.b32.cont [5/16] %v27_v9, 128  ;;  %v65_v53 = vld [vmem:[#allocation2 + $0x150] sm:$0xff]  ;;  %v82_v54 = vld [vmem:[#allocation2 + $0x1d8] sm:$0xff]  ;;  %v83_v56 = vld [vmem:[#allocation2 + $0x1e0] sm:$0xff] }
  0x26   :  { %v66_v55 = vld [vmem:[#allocation2 + $0x158] sm:$0xff]  ;;  %v67_v57 = vld [vmem:[#allocation2 + $0x160] sm:$0xff]  ;;  %v84_v58 = vld [vmem:[#allocation2 + $0x1e8] sm:$0xff] }
  0x27   :  { %v68_v59 = vld [vmem:[#allocation2 + $0x168] sm:$0xff]  ;;  %v85_v60 = vld [vmem:[#allocation2 + $0x1f0] sm:$0xff]  ;;  %v86_v62 = vld [vmem:[#allocation2 + $0x1f8] sm:$0xff] }
  0x28   :  { %188 = vxpose.xlu1.b32.cont [6/16] %v44_v10, 128  ;;  %v69_v61 = vld [vmem:[#allocation2 + $0x170] sm:$0xff]  ;;  %v70_v63 = vld [vmem:[#allocation2 + $0x178] sm:$0xff]  ;;  %v103_v0 = vld [vmem:[#allocation2 + $0x280] sm:$0xff] }
  0x29   :  { %156 = vxpose.xlu0.b32.cont [6/16] %v28_v11, 128  ;;  %v87_v1 = vld [vmem:[#allocation2 + $0x200] sm:$0xff]  ;;  %v104_v4 = vld [vmem:[#allocation2 + $0x288] sm:$0xff]  ;;  %v105_v8 = vld [vmem:[#allocation2 + $0x290] sm:$0xff] }
  0x2a   :  { %v88_v5 = vld [vmem:[#allocation2 + $0x208] sm:$0xff]  ;;  %v89_v9 = vld [vmem:[#allocation2 + $0x210] sm:$0xff] }
  0x2c   :  { %189 = vxpose.xlu1.b32.cont [7/16] %v45_v12, 128  ;;  %v106_v12 = vld [vmem:[#allocation2 + $0x298] sm:$0xff] }
  0x2d   :  { %157 = vxpose.xlu0.b32.cont [7/16] %v29_v13, 128  ;;  %v90_v13 = vld [vmem:[#allocation2 + $0x218] sm:$0xff] }
  0x30   :  { %190 = vxpose.xlu1.b32.cont [8/16] %v46_v14, 128 }
  0x31   :  { %158 = vxpose.xlu0.b32.cont [8/16] %v30_v15, 128 }
  0x34   :  { %191 = vxpose.xlu1.b32.cont [9/16] %v47_v16, 128  ;;  %v107_v16 = vld [vmem:[#allocation2 + $0x2a0] sm:$0xff] }
  0x35   :  { %159 = vxpose.xlu0.b32.cont [9/16] %v31_v17, 128  ;;  %v91_v17 = vld [vmem:[#allocation2 + $0x220] sm:$0xff] }
  0x38   :  { %192 = vxpose.xlu1.b32.cont [10/16] %v48_v18, 128 }
  0x39   :  { %160 = vxpose.xlu0.b32.cont [10/16] %v32_v19, 128 }
  0x3c   :  { %193 = vxpose.xlu1.b32.cont [11/16] %v49_v20, 128  ;;  %v108_v20 = vld [vmem:[#allocation2 + $0x2a8] sm:$0xff] }
  0x3d   :  { %161 = vxpose.xlu0.b32.cont [11/16] %v33_v21, 128  ;;  %v92_v21 = vld [vmem:[#allocation2 + $0x228] sm:$0xff] }
  0x40   :  { %194 = vxpose.xlu1.b32.cont [12/16] %v50_v22, 128 }
  0x41   :  { %162 = vxpose.xlu0.b32.cont [12/16] %v34_v23, 128 }
  0x44   :  { %195 = vxpose.xlu1.b32.cont [13/16] %v51_v24, 128  ;;  %v109_v24 = vld [vmem:[#allocation2 + $0x2b0] sm:$0xff] }
  0x45   :  { %163 = vxpose.xlu0.b32.cont [13/16] %v35_v25, 128  ;;  %v93_v25 = vld [vmem:[#allocation2 + $0x230] sm:$0xff] }
  0x48   :  { %196 = vxpose.xlu1.b32.cont [14/16] %v52_v26, 128 }
  0x49   :  { %164 = vxpose.xlu0.b32.cont [14/16] %v36_v27, 128 }
  0x4c   :  { %197 = vxpose.xlu1.b32.cont [15/16] %v53_v28, 128  ;;  %v110_v28 = vld [vmem:[#allocation2 + $0x2b8] sm:$0xff] }
  0x4d   :  { %165 = vxpose.xlu0.b32.cont [15/16] %v37_v29, 128  ;;  %v94_v29 = vld [vmem:[#allocation2 + $0x238] sm:$0xff] }
  0x50   :  { %198 = vxpose.xlu1.b32.end [16/16] %v54_v30, 128 }
  0x51   :  { %166 = vxpose.xlu0.b32.end [16/16] %v38_v31, 128 }
  0x54   :  { %247 = vxpose.xlu1.b32.start [1/16] %v71_v32, 128  ;;  %v111_v32 = vld [vmem:[#allocation2 + $0x2c0] sm:$0xff] }
  0x55   :  { %215 = vxpose.xlu0.b32.start [1/16] %v55_v33, 128  ;;  %v95_v33 = vld [vmem:[#allocation2 + $0x240] sm:$0xff] }
  0x58   :  { %248 = vxpose.xlu1.b32.cont [2/16] %v72_v34, 128 }
  0x59   :  { %216 = vxpose.xlu0.b32.cont [2/16] %v56_v35, 128 }
  0x5c   :  { %249 = vxpose.xlu1.b32.cont [3/16] %v73_v36, 128  ;;  %v112_v36 = vld [vmem:[#allocation2 + $0x2c8] sm:$0xff] }
  0x5d   :  { %217 = vxpose.xlu0.b32.cont [3/16] %v57_v37, 128  ;;  %v96_v37 = vld [vmem:[#allocation2 + $0x248] sm:$0xff] }
  0x60   :  { %250 = vxpose.xlu1.b32.cont [4/16] %v74_v38, 128 }
  0x61   :  { %218 = vxpose.xlu0.b32.cont [4/16] %v58_v39, 128 }
  0x64   :  { %251 = vxpose.xlu1.b32.cont [5/16] %v75_v40, 128  ;;  %v113_v40 = vld [vmem:[#allocation2 + $0x2d0] sm:$0xff] }
  0x65   :  { %219 = vxpose.xlu0.b32.cont [5/16] %v59_v41, 128  ;;  %v97_v41 = vld [vmem:[#allocation2 + $0x250] sm:$0xff] }
  0x68   :  { %252 = vxpose.xlu1.b32.cont [6/16] %v76_v42, 128 }
  0x69   :  { %220 = vxpose.xlu0.b32.cont [6/16] %v60_v43, 128 }
  0x6c   :  { %253 = vxpose.xlu1.b32.cont [7/16] %v77_v44, 128  ;;  %v114_v44 = vld [vmem:[#allocation2 + $0x2d8] sm:$0xff] }
  0x6d   :  { %221 = vxpose.xlu0.b32.cont [7/16] %v61_v45, 128  ;;  %v98_v45 = vld [vmem:[#allocation2 + $0x258] sm:$0xff] }
  0x70   :  { %254 = vxpose.xlu1.b32.cont [8/16] %v78_v46, 128 }
  0x71   :  { %222 = vxpose.xlu0.b32.cont [8/16] %v62_v47, 128 }
  0x74   :  { %255 = vxpose.xlu1.b32.cont [9/16] %v79_v48, 128  ;;  %v115_v48 = vld [vmem:[#allocation2 + $0x2e0] sm:$0xff] }
  0x75   :  { %223 = vxpose.xlu0.b32.cont [9/16] %v63_v49, 128  ;;  %v99_v49 = vld [vmem:[#allocation2 + $0x260] sm:$0xff] }
  0x78   :  { %256 = vxpose.xlu1.b32.cont [10/16] %v80_v50, 128 }
  0x79   :  { %224 = vxpose.xlu0.b32.cont [10/16] %v64_v51, 128 }
  0x7c   :  { %257 = vxpose.xlu1.b32.cont [11/16] %v81_v52, 128  ;;  %v116_v52 = vld [vmem:[#allocation2 + $0x2e8] sm:$0xff] }
  0x7d   :  { %225 = vxpose.xlu0.b32.cont [11/16] %v65_v53, 128  ;;  %v100_v53 = vld [vmem:[#allocation2 + $0x268] sm:$0xff] }
  0x80   :  { %258 = vxpose.xlu1.b32.cont [12/16] %v82_v54, 128 }
  0x81   :  { %226 = vxpose.xlu0.b32.cont [12/16] %v66_v55, 128 }
  0x84   :  { %259 = vxpose.xlu1.b32.cont [13/16] %v83_v56, 128  ;;  %v117_v56 = vld [vmem:[#allocation2 + $0x2f0] sm:$0xff] }
  0x85   :  { %227 = vxpose.xlu0.b32.cont [13/16] %v67_v57, 128  ;;  %v101_v57 = vld [vmem:[#allocation2 + $0x270] sm:$0xff] }
  0x88   :  { %260 = vxpose.xlu1.b32.cont [14/16] %v84_v58, 128 }
  0x89   :  { %228 = vxpose.xlu0.b32.cont [14/16] %v68_v59, 128 }
  0x8c   :  { %261 = vxpose.xlu1.b32.cont [15/16] %v85_v60, 128  ;;  %v118_v60 = vld [vmem:[#allocation2 + $0x2f8] sm:$0xff] }
  0x8d   :  { %229 = vxpose.xlu0.b32.cont [15/16] %v69_v61, 128  ;;  %v102_v61 = vld [vmem:[#allocation2 + $0x278] sm:$0xff] }
  0x90   :  { %262 = vxpose.xlu1.b32.end [16/16] %v86_v62, 128 }
  0x91   :  { %230 = vxpose.xlu0.b32.end [16/16] %v70_v63, 128 }
  0x94   :  { %311 = vxpose.xlu1.b32.start [1/16] %v103_v0, 128  ;;  %v199_v2 = vpop.trf.xlu1  ;;  %v135_v0 = vld [vmem:[#allocation2 + $0x380] sm:$0xff] }
  0x95   :  { %279 = vxpose.xlu0.b32.start [1/16] %v87_v1, 128  ;;  %v167_v3 = vpop.trf.xlu0  ;;  %423 = vst [vmem:[#allocation5 + $0x80] sm:$0xff] %v199_v2  ;;  %v119_v1 = vld [vmem:[#allocation2 + $0x300] sm:$0xff] }
  0x96   :  { %407 = vst [vmem:[#allocation5] sm:$0xff] %v167_v3 }
  0x98   :  { %312 = vxpose.xlu1.b32.cont [2/16] %v104_v4, 128  ;;  %v200_v6 = vpop.trf.xlu1  ;;  %v136_v4 = vld [vmem:[#allocation2 + $0x388] sm:$0xff] }
  0x99   :  { %280 = vxpose.xlu0.b32.cont [2/16] %v88_v5, 128  ;;  %v168_v7 = vpop.trf.xlu0  ;;  %424 = vst [vmem:[#allocation5 + $0x88] sm:$0xff] %v200_v6  ;;  %v120_v5 = vld [vmem:[#allocation2 + $0x308] sm:$0xff] }
  0x9a   :  { %408 = vst [vmem:[#allocation5 + $0x8] sm:$0xff] %v168_v7 }
  0x9c   :  { %313 = vxpose.xlu1.b32.cont [3/16] %v105_v8, 128  ;;  %v201_v10 = vpop.trf.xlu1  ;;  %v137_v8 = vld [vmem:[#allocation2 + $0x390] sm:$0xff] }
  0x9d   :  { %281 = vxpose.xlu0.b32.cont [3/16] %v89_v9, 128  ;;  %v169_v11 = vpop.trf.xlu0  ;;  %425 = vst [vmem:[#allocation5 + $0x90] sm:$0xff] %v201_v10  ;;  %v121_v9 = vld [vmem:[#allocation2 + $0x310] sm:$0xff] }
  0x9e   :  { %409 = vst [vmem:[#allocation5 + $0x10] sm:$0xff] %v169_v11 }
  0xa0   :  { %314 = vxpose.xlu1.b32.cont [4/16] %v106_v12, 128  ;;  %v202_v14 = vpop.trf.xlu1  ;;  %v138_v12 = vld [vmem:[#allocation2 + $0x398] sm:$0xff] }
  0xa1   :  { %282 = vxpose.xlu0.b32.cont [4/16] %v90_v13, 128  ;;  %v170_v15 = vpop.trf.xlu0  ;;  %426 = vst [vmem:[#allocation5 + $0x98] sm:$0xff] %v202_v14  ;;  %v122_v13 = vld [vmem:[#allocation2 + $0x318] sm:$0xff] }
  0xa2   :  { %410 = vst [vmem:[#allocation5 + $0x18] sm:$0xff] %v170_v15 }
  0xa4   :  { %315 = vxpose.xlu1.b32.cont [5/16] %v107_v16, 128  ;;  %v203_v18 = vpop.trf.xlu1  ;;  %v139_v16 = vld [vmem:[#allocation2 + $0x3a0] sm:$0xff] }
  0xa5   :  { %283 = vxpose.xlu0.b32.cont [5/16] %v91_v17, 128  ;;  %v171_v19 = vpop.trf.xlu0  ;;  %427 = vst [vmem:[#allocation5 + $0xa0] sm:$0xff] %v203_v18  ;;  %v123_v17 = vld [vmem:[#allocation2 + $0x320] sm:$0xff] }
  0xa6   :  { %411 = vst [vmem:[#allocation5 + $0x20] sm:$0xff] %v171_v19 }
  0xa8   :  { %316 = vxpose.xlu1.b32.cont [6/16] %v108_v20, 128  ;;  %v204_v22 = vpop.trf.xlu1  ;;  %v140_v20 = vld [vmem:[#allocation2 + $0x3a8] sm:$0xff] }
  0xa9   :  { %284 = vxpose.xlu0.b32.cont [6/16] %v92_v21, 128  ;;  %v172_v23 = vpop.trf.xlu0  ;;  %428 = vst [vmem:[#allocation5 + $0xa8] sm:$0xff] %v204_v22  ;;  %v124_v21 = vld [vmem:[#allocation2 + $0x328] sm:$0xff] }
  0xaa   :  { %412 = vst [vmem:[#allocation5 + $0x28] sm:$0xff] %v172_v23 }
  0xac   :  { %317 = vxpose.xlu1.b32.cont [7/16] %v109_v24, 128  ;;  %v205_v26 = vpop.trf.xlu1  ;;  %v141_v24 = vld [vmem:[#allocation2 + $0x3b0] sm:$0xff] }
  0xad   :  { %285 = vxpose.xlu0.b32.cont [7/16] %v93_v25, 128  ;;  %v173_v27 = vpop.trf.xlu0  ;;  %429 = vst [vmem:[#allocation5 + $0xb0] sm:$0xff] %v205_v26  ;;  %v125_v25 = vld [vmem:[#allocation2 + $0x330] sm:$0xff] }
  0xae   :  { %413 = vst [vmem:[#allocation5 + $0x30] sm:$0xff] %v173_v27 }
  0xb0   :  { %318 = vxpose.xlu1.b32.cont [8/16] %v110_v28, 128  ;;  %v206_v30 = vpop.trf.xlu1  ;;  %v142_v28 = vld [vmem:[#allocation2 + $0x3b8] sm:$0xff] }
  0xb1   :  { %286 = vxpose.xlu0.b32.cont [8/16] %v94_v29, 128  ;;  %v174_v31 = vpop.trf.xlu0  ;;  %430 = vst [vmem:[#allocation5 + $0xb8] sm:$0xff] %v206_v30  ;;  %v126_v29 = vld [vmem:[#allocation2 + $0x338] sm:$0xff] }
  0xb2   :  { %414 = vst [vmem:[#allocation5 + $0x38] sm:$0xff] %v174_v31 }
  0xb4   :  { %319 = vxpose.xlu1.b32.cont [9/16] %v111_v32, 128  ;;  %v207_v34 = vpop.trf.xlu1  ;;  %v143_v32 = vld [vmem:[#allocation2 + $0x3c0] sm:$0xff] }
  0xb5   :  { %287 = vxpose.xlu0.b32.cont [9/16] %v95_v33, 128  ;;  %v175_v35 = vpop.trf.xlu0  ;;  %431 = vst [vmem:[#allocation5 + $0xc0] sm:$0xff] %v207_v34  ;;  %v127_v33 = vld [vmem:[#allocation2 + $0x340] sm:$0xff] }
  0xb6   :  { %415 = vst [vmem:[#allocation5 + $0x40] sm:$0xff] %v175_v35 }
  0xb8   :  { %320 = vxpose.xlu1.b32.cont [10/16] %v112_v36, 128  ;;  %v208_v38 = vpop.trf.xlu1  ;;  %v144_v36 = vld [vmem:[#allocation2 + $0x3c8] sm:$0xff] }
  0xb9   :  { %288 = vxpose.xlu0.b32.cont [10/16] %v96_v37, 128  ;;  %v176_v39 = vpop.trf.xlu0  ;;  %432 = vst [vmem:[#allocation5 + $0xc8] sm:$0xff] %v208_v38  ;;  %v128_v37 = vld [vmem:[#allocation2 + $0x348] sm:$0xff] }
  0xba   :  { %416 = vst [vmem:[#allocation5 + $0x48] sm:$0xff] %v176_v39 }
  0xbc   :  { %321 = vxpose.xlu1.b32.cont [11/16] %v113_v40, 128  ;;  %v209_v42 = vpop.trf.xlu1  ;;  %v145_v40 = vld [vmem:[#allocation2 + $0x3d0] sm:$0xff] }
  0xbd   :  { %289 = vxpose.xlu0.b32.cont [11/16] %v97_v41, 128  ;;  %v177_v43 = vpop.trf.xlu0  ;;  %433 = vst [vmem:[#allocation5 + $0xd0] sm:$0xff] %v209_v42  ;;  %v129_v41 = vld [vmem:[#allocation2 + $0x350] sm:$0xff] }
  0xbe   :  { %417 = vst [vmem:[#allocation5 + $0x50] sm:$0xff] %v177_v43 }
  0xc0   :  { %322 = vxpose.xlu1.b32.cont [12/16] %v114_v44, 128  ;;  %v210_v46 = vpop.trf.xlu1  ;;  %v146_v44 = vld [vmem:[#allocation2 + $0x3d8] sm:$0xff] }
  0xc1   :  { %290 = vxpose.xlu0.b32.cont [12/16] %v98_v45, 128  ;;  %v178_v47 = vpop.trf.xlu0  ;;  %434 = vst [vmem:[#allocation5 + $0xd8] sm:$0xff] %v210_v46  ;;  %v130_v45 = vld [vmem:[#allocation2 + $0x358] sm:$0xff] }
  0xc2   :  { %418 = vst [vmem:[#allocation5 + $0x58] sm:$0xff] %v178_v47 }
  0xc4   :  { %323 = vxpose.xlu1.b32.cont [13/16] %v115_v48, 128  ;;  %v211_v50 = vpop.trf.xlu1  ;;  %v147_v48 = vld [vmem:[#allocation2 + $0x3e0] sm:$0xff] }
  0xc5   :  { %291 = vxpose.xlu0.b32.cont [13/16] %v99_v49, 128  ;;  %v179_v51 = vpop.trf.xlu0  ;;  %435 = vst [vmem:[#allocation5 + $0xe0] sm:$0xff] %v211_v50  ;;  %v131_v49 = vld [vmem:[#allocation2 + $0x360] sm:$0xff] }
  0xc6   :  { %419 = vst [vmem:[#allocation5 + $0x60] sm:$0xff] %v179_v51 }
  0xc8   :  { %324 = vxpose.xlu1.b32.cont [14/16] %v116_v52, 128  ;;  %v212_v54 = vpop.trf.xlu1  ;;  %v148_v52 = vld [vmem:[#allocation2 + $0x3e8] sm:$0xff] }
  0xc9   :  { %292 = vxpose.xlu0.b32.cont [14/16] %v100_v53, 128  ;;  %v180_v55 = vpop.trf.xlu0  ;;  %436 = vst [vmem:[#allocation5 + $0xe8] sm:$0xff] %v212_v54  ;;  %v132_v53 = vld [vmem:[#allocation2 + $0x368] sm:$0xff] }
  0xca   :  { %420 = vst [vmem:[#allocation5 + $0x68] sm:$0xff] %v180_v55 }
  0xcc   :  { %325 = vxpose.xlu1.b32.cont [15/16] %v117_v56, 128  ;;  %v213_v58 = vpop.trf.xlu1  ;;  %v149_v56 = vld [vmem:[#allocation2 + $0x3f0] sm:$0xff] }
  0xcd   :  { %293 = vxpose.xlu0.b32.cont [15/16] %v101_v57, 128  ;;  %v181_v59 = vpop.trf.xlu0  ;;  %437 = vst [vmem:[#allocation5 + $0xf0] sm:$0xff] %v213_v58  ;;  %v133_v57 = vld [vmem:[#allocation2 + $0x370] sm:$0xff] }
  0xce   :  { %421 = vst [vmem:[#allocation5 + $0x70] sm:$0xff] %v181_v59 }
  0xd0   :  { %326 = vxpose.xlu1.b32.end [16/16] %v118_v60, 128  ;;  %v214_v62 = vpop.trf.xlu1  ;;  %v150_v60 = vld [vmem:[#allocation2 + $0x3f8] sm:$0xff] }
  0xd1   :  { %294 = vxpose.xlu0.b32.end [16/16] %v102_v61, 128  ;;  %v182_v63 = vpop.trf.xlu0  ;;  %438 = vst [vmem:[#allocation5 + $0xf8] sm:$0xff] %v214_v62  ;;  %v134_v61 = vld [vmem:[#allocation2 + $0x378] sm:$0xff] }
  0xd2   :  { %422 = vst [vmem:[#allocation5 + $0x78] sm:$0xff] %v182_v63 }
  0xd4   :  { %375 = vxpose.xlu1.b32.start [1/16] %v135_v0, 128  ;;  %v263_v2 = vpop.trf.xlu1 }
  0xd5   :  { %343 = vxpose.xlu0.b32.start [1/16] %v119_v1, 128  ;;  %v231_v3 = vpop.trf.xlu0  ;;  %455 = vst [vmem:[#allocation5 + $0x180] sm:$0xff] %v263_v2 }
  0xd6   :  { %439 = vst [vmem:[#allocation5 + $0x100] sm:$0xff] %v231_v3 }
  0xd8   :  { %376 = vxpose.xlu1.b32.cont [2/16] %v136_v4, 128  ;;  %v264_v6 = vpop.trf.xlu1 }
  0xd9   :  { %344 = vxpose.xlu0.b32.cont [2/16] %v120_v5, 128  ;;  %v232_v7 = vpop.trf.xlu0  ;;  %456 = vst [vmem:[#allocation5 + $0x188] sm:$0xff] %v264_v6 }
  0xda   :  { %440 = vst [vmem:[#allocation5 + $0x108] sm:$0xff] %v232_v7 }
  0xdc   :  { %377 = vxpose.xlu1.b32.cont [3/16] %v137_v8, 128  ;;  %v265_v10 = vpop.trf.xlu1 }
  0xdd   :  { %345 = vxpose.xlu0.b32.cont [3/16] %v121_v9, 128  ;;  %v233_v11 = vpop.trf.xlu0  ;;  %457 = vst [vmem:[#allocation5 + $0x190] sm:$0xff] %v265_v10 }
  0xde   :  { %441 = vst [vmem:[#allocation5 + $0x110] sm:$0xff] %v233_v11 }
  0xe0   :  { %378 = vxpose.xlu1.b32.cont [4/16] %v138_v12, 128  ;;  %v266_v14 = vpop.trf.xlu1 }
  0xe1   :  { %346 = vxpose.xlu0.b32.cont [4/16] %v122_v13, 128  ;;  %v234_v15 = vpop.trf.xlu0  ;;  %458 = vst [vmem:[#allocation5 + $0x198] sm:$0xff] %v266_v14 }
  0xe2   :  { %442 = vst [vmem:[#allocation5 + $0x118] sm:$0xff] %v234_v15 }
  0xe4   :  { %379 = vxpose.xlu1.b32.cont [5/16] %v139_v16, 128  ;;  %v267_v18 = vpop.trf.xlu1 }
  0xe5   :  { %347 = vxpose.xlu0.b32.cont [5/16] %v123_v17, 128  ;;  %v235_v19 = vpop.trf.xlu0  ;;  %459 = vst [vmem:[#allocation5 + $0x1a0] sm:$0xff] %v267_v18 }
  0xe6   :  { %443 = vst [vmem:[#allocation5 + $0x120] sm:$0xff] %v235_v19 }
  0xe8   :  { %380 = vxpose.xlu1.b32.cont [6/16] %v140_v20, 128  ;;  %v268_v22 = vpop.trf.xlu1 }
  0xe9   :  { %348 = vxpose.xlu0.b32.cont [6/16] %v124_v21, 128  ;;  %v236_v23 = vpop.trf.xlu0  ;;  %460 = vst [vmem:[#allocation5 + $0x1a8] sm:$0xff] %v268_v22 }
  0xea   :  { %444 = vst [vmem:[#allocation5 + $0x128] sm:$0xff] %v236_v23 }
  0xec   :  { %381 = vxpose.xlu1.b32.cont [7/16] %v141_v24, 128  ;;  %v269_v26 = vpop.trf.xlu1 }
  0xed   :  { %349 = vxpose.xlu0.b32.cont [7/16] %v125_v25, 128  ;;  %v237_v27 = vpop.trf.xlu0  ;;  %461 = vst [vmem:[#allocation5 + $0x1b0] sm:$0xff] %v269_v26 }
  0xee   :  { %445 = vst [vmem:[#allocation5 + $0x130] sm:$0xff] %v237_v27 }
  0xf0   :  { %382 = vxpose.xlu1.b32.cont [8/16] %v142_v28, 128  ;;  %v270_v30 = vpop.trf.xlu1 }
  0xf1   :  { %350 = vxpose.xlu0.b32.cont [8/16] %v126_v29, 128  ;;  %v238_v31 = vpop.trf.xlu0  ;;  %462 = vst [vmem:[#allocation5 + $0x1b8] sm:$0xff] %v270_v30 }
  0xf2   :  { %446 = vst [vmem:[#allocation5 + $0x138] sm:$0xff] %v238_v31 }
  0xf4   :  { %383 = vxpose.xlu1.b32.cont [9/16] %v143_v32, 128  ;;  %v271_v34 = vpop.trf.xlu1 }
  0xf5   :  { %351 = vxpose.xlu0.b32.cont [9/16] %v127_v33, 128  ;;  %v239_v35 = vpop.trf.xlu0  ;;  %463 = vst [vmem:[#allocation5 + $0x1c0] sm:$0xff] %v271_v34 }
  0xf6   :  { %447 = vst [vmem:[#allocation5 + $0x140] sm:$0xff] %v239_v35 }
  0xf8   :  { %384 = vxpose.xlu1.b32.cont [10/16] %v144_v36, 128  ;;  %v272_v38 = vpop.trf.xlu1 }
  0xf9   :  { %352 = vxpose.xlu0.b32.cont [10/16] %v128_v37, 128  ;;  %v240_v39 = vpop.trf.xlu0  ;;  %464 = vst [vmem:[#allocation5 + $0x1c8] sm:$0xff] %v272_v38 }
  0xfa   :  { %448 = vst [vmem:[#allocation5 + $0x148] sm:$0xff] %v240_v39 }
  0xfc   :  { %385 = vxpose.xlu1.b32.cont [11/16] %v145_v40, 128  ;;  %v273_v42 = vpop.trf.xlu1 }
  0xfd   :  { %353 = vxpose.xlu0.b32.cont [11/16] %v129_v41, 128  ;;  %v241_v43 = vpop.trf.xlu0  ;;  %465 = vst [vmem:[#allocation5 + $0x1d0] sm:$0xff] %v273_v42 }
  0xfe   :  { %449 = vst [vmem:[#allocation5 + $0x150] sm:$0xff] %v241_v43 }
 0x100   :  { %386 = vxpose.xlu1.b32.cont [12/16] %v146_v44, 128  ;;  %v274_v46 = vpop.trf.xlu1 }
 0x101   :  { %354 = vxpose.xlu0.b32.cont [12/16] %v130_v45, 128  ;;  %v242_v47 = vpop.trf.xlu0  ;;  %466 = vst [vmem:[#allocation5 + $0x1d8] sm:$0xff] %v274_v46 }
 0x102   :  { %450 = vst [vmem:[#allocation5 + $0x158] sm:$0xff] %v242_v47 }
 0x104   :  { %387 = vxpose.xlu1.b32.cont [13/16] %v147_v48, 128  ;;  %v275_v50 = vpop.trf.xlu1 }
 0x105   :  { %355 = vxpose.xlu0.b32.cont [13/16] %v131_v49, 128  ;;  %v243_v51 = vpop.trf.xlu0  ;;  %467 = vst [vmem:[#allocation5 + $0x1e0] sm:$0xff] %v275_v50 }
 0x106   :  { %451 = vst [vmem:[#allocation5 + $0x160] sm:$0xff] %v243_v51 }
 0x108   :  { %388 = vxpose.xlu1.b32.cont [14/16] %v148_v52, 128  ;;  %v276_v54 = vpop.trf.xlu1 }
 0x109   :  { %356 = vxpose.xlu0.b32.cont [14/16] %v132_v53, 128  ;;  %v244_v55 = vpop.trf.xlu0  ;;  %468 = vst [vmem:[#allocation5 + $0x1e8] sm:$0xff] %v276_v54 }
 0x10a   :  { %452 = vst [vmem:[#allocation5 + $0x168] sm:$0xff] %v244_v55 }
 0x10c   :  { %389 = vxpose.xlu1.b32.cont [15/16] %v149_v56, 128  ;;  %v277_v58 = vpop.trf.xlu1 }
 0x10d   :  { %357 = vxpose.xlu0.b32.cont [15/16] %v133_v57, 128  ;;  %v245_v59 = vpop.trf.xlu0  ;;  %469 = vst [vmem:[#allocation5 + $0x1f0] sm:$0xff] %v277_v58 }
 0x10e   :  { %453 = vst [vmem:[#allocation5 + $0x170] sm:$0xff] %v245_v59 }
 0x110   :  { %390 = vxpose.xlu1.b32.end [16/16] %v150_v60, 128  ;;  %v278_v62 = vpop.trf.xlu1 }
 0x111   :  { %358 = vxpose.xlu0.b32.end [16/16] %v134_v61, 128  ;;  %v246_v63 = vpop.trf.xlu0  ;;  %470 = vst [vmem:[#allocation5 + $0x1f8] sm:$0xff] %v278_v62 }
 0x112   :  { %454 = vst [vmem:[#allocation5 + $0x178] sm:$0xff] %v246_v63 }
 0x114   :  { %v327_v0 = vpop.trf.xlu1 }
 0x115   :  { %v295_v1 = vpop.trf.xlu0  ;;  %487 = vst [vmem:[#allocation5 + $0x280] sm:$0xff] %v327_v0 }
 0x116   :  { %471 = vst [vmem:[#allocation5 + $0x200] sm:$0xff] %v295_v1 }
 0x118   :  { %v328_v2 = vpop.trf.xlu1 }
 0x119   :  { %v296_v3 = vpop.trf.xlu0  ;;  %488 = vst [vmem:[#allocation5 + $0x288] sm:$0xff] %v328_v2 }
 0x11a   :  { %472 = vst [vmem:[#allocation5 + $0x208] sm:$0xff] %v296_v3 }
 0x11c   :  { %v329_v4 = vpop.trf.xlu1 }
 0x11d   :  { %v297_v5 = vpop.trf.xlu0  ;;  %489 = vst [vmem:[#allocation5 + $0x290] sm:$0xff] %v329_v4 }
 0x11e   :  { %473 = vst [vmem:[#allocation5 + $0x210] sm:$0xff] %v297_v5 }
 0x120   :  { %v330_v6 = vpop.trf.xlu1 }
 0x121   :  { %v298_v7 = vpop.trf.xlu0  ;;  %490 = vst [vmem:[#allocation5 + $0x298] sm:$0xff] %v330_v6 }
 0x122   :  { %474 = vst [vmem:[#allocation5 + $0x218] sm:$0xff] %v298_v7 }
 0x124   :  { %v331_v8 = vpop.trf.xlu1 }
 0x125   :  { %v299_v9 = vpop.trf.xlu0  ;;  %491 = vst [vmem:[#allocation5 + $0x2a0] sm:$0xff] %v331_v8 }
 0x126   :  { %475 = vst [vmem:[#allocation5 + $0x220] sm:$0xff] %v299_v9 }
 0x128   :  { %v332_v10 = vpop.trf.xlu1 }
 0x129   :  { %v300_v11 = vpop.trf.xlu0  ;;  %492 = vst [vmem:[#allocation5 + $0x2a8] sm:$0xff] %v332_v10 }
 0x12a   :  { %476 = vst [vmem:[#allocation5 + $0x228] sm:$0xff] %v300_v11 }
 0x12c   :  { %v333_v12 = vpop.trf.xlu1 }
 0x12d   :  { %v301_v13 = vpop.trf.xlu0  ;;  %493 = vst [vmem:[#allocation5 + $0x2b0] sm:$0xff] %v333_v12 }
 0x12e   :  { %477 = vst [vmem:[#allocation5 + $0x230] sm:$0xff] %v301_v13 }
 0x130   :  { %v334_v14 = vpop.trf.xlu1 }
 0x131   :  { %v302_v15 = vpop.trf.xlu0  ;;  %494 = vst [vmem:[#allocation5 + $0x2b8] sm:$0xff] %v334_v14 }
 0x132   :  { %478 = vst [vmem:[#allocation5 + $0x238] sm:$0xff] %v302_v15 }
 0x134   :  { %v335_v16 = vpop.trf.xlu1 }
 0x135   :  { %v303_v17 = vpop.trf.xlu0  ;;  %495 = vst [vmem:[#allocation5 + $0x2c0] sm:$0xff] %v335_v16 }
 0x136   :  { %479 = vst [vmem:[#allocation5 + $0x240] sm:$0xff] %v303_v17 }
 0x138   :  { %v336_v18 = vpop.trf.xlu1 }
 0x139   :  { %v304_v19 = vpop.trf.xlu0  ;;  %496 = vst [vmem:[#allocation5 + $0x2c8] sm:$0xff] %v336_v18 }
 0x13a   :  { %480 = vst [vmem:[#allocation5 + $0x248] sm:$0xff] %v304_v19 }
 0x13c   :  { %v337_v20 = vpop.trf.xlu1 }
 0x13d   :  { %v305_v21 = vpop.trf.xlu0  ;;  %497 = vst [vmem:[#allocation5 + $0x2d0] sm:$0xff] %v337_v20 }
 0x13e   :  { %481 = vst [vmem:[#allocation5 + $0x250] sm:$0xff] %v305_v21 }
 0x140   :  { %v338_v22 = vpop.trf.xlu1 }
 0x141   :  { %v306_v23 = vpop.trf.xlu0  ;;  %498 = vst [vmem:[#allocation5 + $0x2d8] sm:$0xff] %v338_v22 }
 0x142   :  { %482 = vst [vmem:[#allocation5 + $0x258] sm:$0xff] %v306_v23 }
 0x144   :  { %v339_v24 = vpop.trf.xlu1 }
 0x145   :  { %v307_v25 = vpop.trf.xlu0  ;;  %499 = vst [vmem:[#allocation5 + $0x2e0] sm:$0xff] %v339_v24 }
 0x146   :  { %483 = vst [vmem:[#allocation5 + $0x260] sm:$0xff] %v307_v25 }
 0x148   :  { %v340_v26 = vpop.trf.xlu1 }
 0x149   :  { %v308_v27 = vpop.trf.xlu0  ;;  %500 = vst [vmem:[#allocation5 + $0x2e8] sm:$0xff] %v340_v26 }
 0x14a   :  { %484 = vst [vmem:[#allocation5 + $0x268] sm:$0xff] %v308_v27 }
 0x14c   :  { %v341_v28 = vpop.trf.xlu1 }
 0x14d   :  { %v309_v29 = vpop.trf.xlu0  ;;  %501 = vst [vmem:[#allocation5 + $0x2f0] sm:$0xff] %v341_v28 }
 0x14e   :  { %485 = vst [vmem:[#allocation5 + $0x270] sm:$0xff] %v309_v29 }
 0x150   :  { %v342_v30 = vpop.trf.xlu1 }
 0x151   :  { %v310_v31 = vpop.trf.xlu0  ;;  %502 = vst [vmem:[#allocation5 + $0x2f8] sm:$0xff] %v342_v30 }
 0x152   :  { %486 = vst [vmem:[#allocation5 + $0x278] sm:$0xff] %v310_v31 }
 0x154   :  { %v391_v32 = vpop.trf.xlu1 }
 0x155   :  { %v359_v33 = vpop.trf.xlu0  ;;  %519 = vst [vmem:[#allocation5 + $0x380] sm:$0xff] %v391_v32 }
 0x156   :  { %503 = vst [vmem:[#allocation5 + $0x300] sm:$0xff] %v359_v33 }
 0x158   :  { %v392_v34 = vpop.trf.xlu1 }
 0x159   :  { %v360_v35 = vpop.trf.xlu0  ;;  %520 = vst [vmem:[#allocation5 + $0x388] sm:$0xff] %v392_v34 }
 0x15a   :  { %504 = vst [vmem:[#allocation5 + $0x308] sm:$0xff] %v360_v35 }
 0x15c   :  { %v393_v36 = vpop.trf.xlu1 }
 0x15d   :  { %v361_v37 = vpop.trf.xlu0  ;;  %521 = vst [vmem:[#allocation5 + $0x390] sm:$0xff] %v393_v36 }
 0x15e   :  { %505 = vst [vmem:[#allocation5 + $0x310] sm:$0xff] %v361_v37 }
 0x160   :  { %v394_v38 = vpop.trf.xlu1 }
 0x161   :  { %v362_v39 = vpop.trf.xlu0  ;;  %522 = vst [vmem:[#allocation5 + $0x398] sm:$0xff] %v394_v38 }
 0x162   :  { %506 = vst [vmem:[#allocation5 + $0x318] sm:$0xff] %v362_v39 }
 0x164   :  { %v395_v40 = vpop.trf.xlu1 }
 0x165   :  { %v363_v41 = vpop.trf.xlu0  ;;  %523 = vst [vmem:[#allocation5 + $0x3a0] sm:$0xff] %v395_v40 }
 0x166   :  { %507 = vst [vmem:[#allocation5 + $0x320] sm:$0xff] %v363_v41 }
 0x168   :  { %v396_v42 = vpop.trf.xlu1 }
 0x169   :  { %v364_v43 = vpop.trf.xlu0  ;;  %524 = vst [vmem:[#allocation5 + $0x3a8] sm:$0xff] %v396_v42 }
 0x16a   :  { %508 = vst [vmem:[#allocation5 + $0x328] sm:$0xff] %v364_v43 }
 0x16c   :  { %v397_v44 = vpop.trf.xlu1 }
 0x16d   :  { %v365_v45 = vpop.trf.xlu0  ;;  %525 = vst [vmem:[#allocation5 + $0x3b0] sm:$0xff] %v397_v44 }
 0x16e   :  { %509 = vst [vmem:[#allocation5 + $0x330] sm:$0xff] %v365_v45 }
 0x170   :  { %v398_v46 = vpop.trf.xlu1 }
 0x171   :  { %v366_v47 = vpop.trf.xlu0  ;;  %526 = vst [vmem:[#allocation5 + $0x3b8] sm:$0xff] %v398_v46 }
 0x172   :  { %510 = vst [vmem:[#allocation5 + $0x338] sm:$0xff] %v366_v47 }
 0x174   :  { %v399_v48 = vpop.trf.xlu1 }
 0x175   :  { %v367_v49 = vpop.trf.xlu0  ;;  %527 = vst [vmem:[#allocation5 + $0x3c0] sm:$0xff] %v399_v48 }
 0x176   :  { %511 = vst [vmem:[#allocation5 + $0x340] sm:$0xff] %v367_v49 }
 0x178   :  { %v400_v50 = vpop.trf.xlu1 }
 0x179   :  { %v368_v51 = vpop.trf.xlu0  ;;  %528 = vst [vmem:[#allocation5 + $0x3c8] sm:$0xff] %v400_v50 }
 0x17a   :  { %512 = vst [vmem:[#allocation5 + $0x348] sm:$0xff] %v368_v51 }
 0x17c   :  { %v401_v52 = vpop.trf.xlu1 }
 0x17d   :  { %v369_v53 = vpop.trf.xlu0  ;;  %529 = vst [vmem:[#allocation5 + $0x3d0] sm:$0xff] %v401_v52 }
 0x17e   :  { %513 = vst [vmem:[#allocation5 + $0x350] sm:$0xff] %v369_v53 }
 0x180   :  { %v402_v54 = vpop.trf.xlu1 }
 0x181   :  { %v370_v55 = vpop.trf.xlu0  ;;  %530 = vst [vmem:[#allocation5 + $0x3d8] sm:$0xff] %v402_v54 }
 0x182   :  { %514 = vst [vmem:[#allocation5 + $0x358] sm:$0xff] %v370_v55 }
 0x184   :  { %v403_v56 = vpop.trf.xlu1 }
 0x185   :  { %v371_v57 = vpop.trf.xlu0  ;;  %531 = vst [vmem:[#allocation5 + $0x3e0] sm:$0xff] %v403_v56 }
 0x186   :  { %515 = vst [vmem:[#allocation5 + $0x360] sm:$0xff] %v371_v57 }
 0x188   :  { %v404_v58 = vpop.trf.xlu1 }
 0x189   :  { %v372_v59 = vpop.trf.xlu0  ;;  %532 = vst [vmem:[#allocation5 + $0x3e8] sm:$0xff] %v404_v58 }
 0x18a   :  { %516 = vst [vmem:[#allocation5 + $0x368] sm:$0xff] %v372_v59 }
 0x18c   :  { %v405_v60 = vpop.trf.xlu1 }
 0x18d   :  { %v373_v61 = vpop.trf.xlu0  ;;  %533 = vst [vmem:[#allocation5 + $0x3f0] sm:$0xff] %v405_v60 }
 0x18e   :  { %517 = vst [vmem:[#allocation5 + $0x370] sm:$0xff] %v373_v61 }
 0x190   :  { %v406_v62 = vpop.trf.xlu1 }
 0x191   :  { %v374_v63 = vpop.trf.xlu0  ;;  %534 = vst [vmem:[#allocation5 + $0x3f8] sm:$0xff] %v406_v62 }
 0x192   :  { %518 = vst [vmem:[#allocation5 + $0x378] sm:$0xff] %v374_v63 }
 0x193   :  { %589 = shalt.err (!%p586_p12)
}
 0x194   :  { %s590_s24 = scalar_lea.hbm %s649_s1, 16384 }
 0x195   :  { %p591_p13 = scmp.ne.s32.totalorder %s649_s1, %s590_s24  ;;  %p594_p0 = scmp.lt.u32.totalorder %s590_s24, %s649_s1 }
 0x197   :  { %p596_p1 = pnand %p594_p0, %p591_p13 }
 0x199   :  { %599 = shalt.err (!%p596_p1)
}
 0x19a   :  { %546 = dma.vmem_to_hbm [thread:$0]  %s541_s20, 16384, %s649_s1, [#allocation4], %s605_s16, %s605_s16, %s606_s17  }
 0x19b   :  { %602 = dma.done.wait [#allocation4], 16384  }
 0x19c   :  { %603 = vsyncadd [#allocation4], 4294950912 }
 0x19d   :  { %550 = vsyncpa [#allocation3], 1 }
 0x19e   :  { %551 = vsyncpa [#allocation4], 1 }

</bundles_post_ra>
